<compile_context>
chip_gen: v5e
topology: v5e:2x2
jax: 0.10.0
libtpu: 0.0.40
codegen_flags: <defaults>
</compile_context>

<pallas_src>
import functools

import jax
import jax.numpy as jnp
from jax.experimental import pallas as pl
from jax.experimental.pallas import tpu as pltpu


def _round_up(n: int, m: int) -> int:
    return ((n + m - 1) // m) * m


def _make_fused_mlp_kernel(n_layers: int):
    """Kernel computing relu(... relu(x @ W1 + b1) ... @ WL + bL) in one pass."""

    def kernel(x_ref, *refs):
        o_ref = refs[-1]
        h = x_ref[...]                                    # bf16 activations
        for layer in range(n_layers):
            w_ref = refs[2 * layer]
            b_ref = refs[2 * layer + 1]
            # MXU matmul (bf16 inputs, f32 accumulation), VPU bias + ReLU in f32.
            h = jnp.dot(h, w_ref[...], preferred_element_type=jnp.float32)
            h = jnp.maximum(h + b_ref[...], 0.0)          # b_ref is (1, Dout_p)
            if layer + 1 < n_layers:
                h = h.astype(jnp.bfloat16)                # back to bf16 for next MXU pass
        o_ref[...] = h                                    # lane-dense f32 store

    return kernel


# Max rows per batch tile; weights + one activation tile are << VMEM on v5e/v6e/v7x.
_BATCH_TILE = 256


@functools.partial(jax.jit, static_argnames=("dims",))
def mlp_forward(x, padded_params, dims):
    """Equivalent of MLPModule.forward: flatten, then (Linear -> ReLU -> Dropout)*L.

    Note: the PyTorch module applies ReLU + Dropout after EVERY Linear, including
    the last one, so the final layer output is also ReLU'd here.
    """
    # Glue: 3-D input -> unsqueeze(0); flatten to (B, -1).
    if x.ndim == 3:
        x = x[None]
    x = x.reshape(x.shape[0], -1).astype(jnp.float32)
    B, din = x.shape
    din_p = _round_up(din, 128)

    # Pad the batch to a bf16-friendly sublane multiple and pick a batch tile.
    if B <= _BATCH_TILE:
        tb = _round_up(B, 16)
        bp = tb
    else:
        tb = _BATCH_TILE
        bp = _round_up(B, tb)

    xp = jnp.zeros((bp, din_p), jnp.bfloat16).at[:B, :din].set(x.astype(jnp.bfloat16))

    n_layers = len(padded_params)
    out_p = padded_params[-1][0].shape[1]

    # BlockSpecs: activations stream over the batch grid axis; weights/biases use a
    # constant block index so they are DMA'd once and stay resident in VMEM.
    in_specs = [pl.BlockSpec((tb, din_p), lambda i: (i, 0))]
    flat_params = [xp]
    for w, b in padded_params:
        dinl, doutl = w.shape
        in_specs.append(pl.BlockSpec((dinl, doutl), lambda i: (0, 0)))
        in_specs.append(pl.BlockSpec((1, doutl), lambda i: (0, 0)))
        flat_params.append(w)
        flat_params.append(b)

    out = pl.pallas_call(
        _make_fused_mlp_kernel(n_layers),
        out_shape=jax.ShapeDtypeStruct((bp, out_p), jnp.float32),
        grid=(bp // tb,),
        in_specs=in_specs,
        out_specs=pl.BlockSpec((tb, out_p), lambda i: (i, 0)),
        compiler_params=pltpu.CompilerParams(
            dimension_semantics=("parallel",)   # batch tiles -> megacore/dual-TC on v7x
        ),
    )(*flat_params)

    # Strip the batch / lane padding back to the module's true output shape.
    return out[:B, : dims[-1]]


def init_mlp_params(key, dims):
    """Deterministic PyTorch-style nn.Linear init: U(-1/sqrt(fan_in), 1/sqrt(fan_in)).

    Weights are stored (in_features, out_features) so the kernel computes x @ W + b.
    """
    params = []
    for i in range(len(dims) - 1):
        fan_in, fan_out = dims[i], dims[i + 1]
        key, kw, kb = jax.random.split(key, 3)
        bound = 1.0 / jnp.sqrt(jnp.float32(fan_in))
        w = jax.random.uniform(kw, (fan_in, fan_out), jnp.float32, -bound, bound)
        b = jax.random.uniform(kb, (fan_out,), jnp.float32, -bound, bound)
        params.append((w, b))
    return params


def prepare_params(params):
    """Zero-pad each layer to 128-lane multiples and cast weights to bf16.

    Correctness of padding: padded input columns of x are zero, padded weight
    columns and padded bias entries are zero, so padded hidden lanes are
    ReLU(0) = 0 and contribute nothing to the next layer; the valid output
    columns are unchanged (up to bf16 rounding of the matmul inputs).
    """
    padded = []
    for w, b in params:
        din, dout = w.shape
        din_p, dout_p = _round_up(din, 128), _round_up(dout, 128)
        wp = (
            jnp.zeros((din_p, dout_p), jnp.bfloat16)
            .at[:din, :dout]
            .set(w.astype(jnp.bfloat16))
        )
        bp = jnp.zeros((1, dout_p), jnp.float32).at[:, :dout].set(b[None, :])
        padded.append((wp, bp))
    return padded


def _reference_forward(x, params):
    """Pure-JAX f32 reference of MLPModule.forward (dropout = identity)."""
    if x.ndim == 3:
        x = x[None]
    h = x.reshape(x.shape[0], -1).astype(jnp.float32)
    for w, b in params:
        h = jnp.maximum(h @ w + b[None, :], 0.0)
    return h


if __name__ == "__main__":
    dims = (784, 100, 10)                 # default MLPModule dims
    key = jax.random.PRNGKey(0)
    key, kx = jax.random.split(key)

    # Example input: batch=2 MNIST-like images, NCHW (2, 1, 28, 28) -> flattened to (2, 784).
    x = jax.random.normal(kx, (2, 1, 28, 28), jnp.float32)

    params = init_mlp_params(jax.random.PRNGKey(0), list(dims))
    padded_params = prepare_params(params)

    out = mlp_forward(x, padded_params, dims=dims)
    out = jax.block_until_ready(out)

    assert out.shape == (2, dims[-1]), out.shape
    assert out.dtype == jnp.float32
    assert bool(jnp.all(out >= 0.0))      # final ReLU applied, per the module's layer loop

    # Loose tolerance: kernel uses bf16 MXU inputs with f32 accumulation.
    ref = _reference_forward(x, params)
    assert bool(jnp.allclose(out, ref, atol=5e-2, rtol=5e-2)), (out, ref)

    print("KERNEL_OK")
</pallas_src>

<mosaic_0001>
module attributes {stable_mosaic.version = 11 : i64} {
  func.func @kernel(%arg0: i32, %arg1: memref<16x896xbf16, #tpu.memory_space<vmem>>, %arg2: memref<896x128xbf16, #tpu.memory_space<vmem>>, %arg3: memref<1x128xf32, #tpu.memory_space<vmem>>, %arg4: memref<128x128xbf16, #tpu.memory_space<vmem>>, %arg5: memref<1x128xf32, #tpu.memory_space<vmem>>, %arg6: memref<16x128xf32, #tpu.memory_space<vmem>>) attributes {dimension_semantics = [#tpu.dimension_semantics<parallel>], iteration_bounds = array<i64: 1>, scalar_prefetch = 0 : i64, scratch_operands = 0 : i64, tpu.core_type = #tpu.core_type<tc>, window_params = [{transform_indices = @transform_0, window_bounds = array<i64: 16, 896>}, {pipeline_mode = #tpu.pipeline_mode<synchronous>, transform_indices = @transform_1, window_bounds = array<i64: 896, 128>}, {pipeline_mode = #tpu.pipeline_mode<synchronous>, transform_indices = @transform_2, window_bounds = array<i64: 1, 128>}, {pipeline_mode = #tpu.pipeline_mode<synchronous>, transform_indices = @transform_3, window_bounds = array<i64: 128, 128>}, {pipeline_mode = #tpu.pipeline_mode<synchronous>, transform_indices = @transform_4, window_bounds = array<i64: 1, 128>}, {transform_indices = @transform_5, window_bounds = array<i64: 16, 128>}]} {
    %c0 = arith.constant 0 : index
    %c0_0 = arith.constant 0 : index
    %0 = vector.load %arg1[%c0, %c0_0] : memref<16x896xbf16, #tpu.memory_space<vmem>>, vector<16x896xbf16>
    %c0_1 = arith.constant 0 : index
    %c0_2 = arith.constant 0 : index
    %1 = vector.load %arg2[%c0_1, %c0_2] : memref<896x128xbf16, #tpu.memory_space<vmem>>, vector<896x128xbf16>
    %cst = arith.constant dense<0.000000e+00> : vector<16x128xf32>
    %2 = tpu.matmul %0, %1, %cst {dimension_numbers = #tpu.dot_dimension_numbers<[1], [0], [0], [1], [0, 0, 1, 1], [], []>} : vector<16x896xbf16>, vector<896x128xbf16>, vector<16x128xf32> -> vector<16x128xf32>
    %c0_3 = arith.constant 0 : index
    %c0_4 = arith.constant 0 : index
    %3 = vector.load %arg3[%c0_3, %c0_4] : memref<1x128xf32, #tpu.memory_space<vmem>>, vector<1x128xf32>
    %4 = vector.broadcast %3 : vector<1x128xf32> to vector<16x128xf32>
    %5 = arith.addf %2, %4 : vector<16x128xf32>
    %cst_5 = arith.constant 0.000000e+00 : f32
    %6 = vector.broadcast %cst_5 : f32 to vector<16x128xf32>
    %7 = arith.maximumf %5, %6 : vector<16x128xf32>
    %8 = arith.truncf %7 : vector<16x128xf32> to vector<16x128xbf16>
    %c0_6 = arith.constant 0 : index
    %c0_7 = arith.constant 0 : index
    %9 = vector.load %arg4[%c0_6, %c0_7] : memref<128x128xbf16, #tpu.memory_space<vmem>>, vector<128x128xbf16>
    %cst_8 = arith.constant dense<0.000000e+00> : vector<16x128xf32>
    %10 = tpu.matmul %8, %9, %cst_8 {dimension_numbers = #tpu.dot_dimension_numbers<[1], [0], [0], [1], [0, 0, 1, 1], [], []>} : vector<16x128xbf16>, vector<128x128xbf16>, vector<16x128xf32> -> vector<16x128xf32>
    %c0_9 = arith.constant 0 : index
    %c0_10 = arith.constant 0 : index
    %11 = vector.load %arg5[%c0_9, %c0_10] : memref<1x128xf32, #tpu.memory_space<vmem>>, vector<1x128xf32>
    %12 = vector.broadcast %11 : vector<1x128xf32> to vector<16x128xf32>
    %13 = arith.addf %10, %12 : vector<16x128xf32>
    %cst_11 = arith.constant 0.000000e+00 : f32
    %14 = vector.broadcast %cst_11 : f32 to vector<16x128xf32>
    %15 = arith.maximumf %13, %14 : vector<16x128xf32>
    %c0_12 = arith.constant 0 : index
    %c0_13 = arith.constant 0 : index
    %16 = vector.load %arg6[%c0_12, %c0_13] : memref<16x128xf32, #tpu.memory_space<vmem>>, vector<16x128xf32>
    tpu.vector_store %arg6[%c0_12, %c0_13], %15 {strides = array<i32>} : memref<16x128xf32, #tpu.memory_space<vmem>>, vector<16x128xf32>,
    return
  }
  func.func @transform_0(%arg0: i32) -> (i32, i32) {
    %c0_i32 = arith.constant 0 : i32
    %c0_i32_0 = arith.constant 0 : i32
    return %arg0, %c0_i32 : i32, i32
  }
  func.func @transform_1(%arg0: i32) -> (i32, i32) {
    %c0_i32 = arith.constant 0 : i32
    %c0_i32_0 = arith.constant 0 : i32
    %c0_i32_1 = arith.constant 0 : i32
    return %c0_i32, %c0_i32_0 : i32, i32
  }
  func.func @transform_2(%arg0: i32) -> (i32, i32) {
    %c0_i32 = arith.constant 0 : i32
    %c0_i32_0 = arith.constant 0 : i32
    %c0_i32_1 = arith.constant 0 : i32
    return %c0_i32, %c0_i32_0 : i32, i32
  }
  func.func @transform_3(%arg0: i32) -> (i32, i32) {
    %c0_i32 = arith.constant 0 : i32
    %c0_i32_0 = arith.constant 0 : i32
    %c0_i32_1 = arith.constant 0 : i32
    return %c0_i32, %c0_i32_0 : i32, i32
  }
  func.func @transform_4(%arg0: i32) -> (i32, i32) {
    %c0_i32 = arith.constant 0 : i32
    %c0_i32_0 = arith.constant 0 : i32
    %c0_i32_1 = arith.constant 0 : i32
    return %c0_i32, %c0_i32_0 : i32, i32
  }
  func.func @transform_5(%arg0: i32) -> (i32, i32) {
    %c0_i32 = arith.constant 0 : i32
    %c0_i32_0 = arith.constant 0 : i32
    return %arg0, %c0_i32 : i32, i32
  }
}

</mosaic_0001>

<bundles_post_ra>
// kernel: mlp_forward.1
= control target key start
LH: loop header
LB: loop body
LE: loop exit
PB: predicated region body
PF: predicated region fallthrough
CT: control target
= control target key end

     0   :  { %10 = vsyncpa [#allocation3], 0  ;;  %s1110_s21 = smov [#allocation2]   ;;  %s1111_s23 = smov 64   ;;  %s1224_s0 = inlined_call_operand.vmem [shape: bf16[16,896], index: 0, kind: input, shape index: {}]   ;;  %s1225_s1 = inlined_call_operand.hbm [shape: bf16[896,128], index: 1, kind: input, shape index: {}]   ;;  %s1226_s2 = inlined_call_operand.vmem [shape: f32[1,128], index: 2, kind: input, shape index: {}]   ;;  %s1227_s3 = inlined_call_operand.vmem [shape: bf16[128,128], index: 3, kind: input, shape index: {}]   ;;  %s1228_s4 = inlined_call_operand.vmem [shape: f32[1,128], index: 4, kind: input, shape index: {}]   ;;  %s1229_s5 = inlined_call_operand.vmem [shape: f32[16,128], index: 5, kind: output, shape index: {}]  }
   0x1   :  { %s17_s20 = sshll.u32 %s1225_s1, 4  ;;  %s19_s22 = sshll.u32 %s1110_s21, 4  ;;  %s18_s20 = int_to_ptr.hbm [resolvable:$true] %s17_s20  ;;  %s20_s22 = int_to_ptr.vmem [resolvable:$true] %s19_s22 }
   0x2   :  { %s1112_s24 = smov 4  }
   0x3   :  { %25 = dma.hbm_to_vmem [thread:$0]  %s18_s20, 7168, %s20_s22, [#allocation3], %s1111_s23, %s1111_s23, %s1112_s24  }
   0x4   :  { %1108 = dma.done.wait [#allocation3], 7168  }
   0x5   :  { %1109 = vsyncadd [#allocation3], 4294960128  ;;  %v1022_v0 = vld [vmem:[#allocation2 + $0x38] sm:$0xff]  ;;  %v1021_v3 = vld [vmem:[#allocation2 + $0x30] sm:$0xff] }
   0x6   :  { %v1030_v1 = vld [vmem:[#allocation2 + $0x78] sm:$0xff]  ;;  %532 = vmatpush.bf16.msra.mxu0 %v1022_v0  ;;  %v1029_v4 = vld [vmem:[#allocation2 + $0x70] sm:$0xff]  ;;  %v1020_v8 = vld [vmem:[#allocation2 + $0x28] sm:$0xff] }
   0x7   :  { %v1038_v2 = vld [vmem:[#allocation2 + $0xb8] sm:$0xff]  ;;  %546 = vmatpush.bf16.msra.mxu1 %v1030_v1  ;;  %v1037_v6 = vld [vmem:[#allocation2 + $0xb0] sm:$0xff]  ;;  %v1028_v9 = vld [vmem:[#allocation2 + $0x68] sm:$0xff] }
   0x8   :  { %v1046_v5 = vld [vmem:[#allocation2 + $0xf8] sm:$0xff]  ;;  %560 = vmatpush.bf16.msra.mxu2 %v1038_v2  ;;  %v1045_v7 = vld [vmem:[#allocation2 + $0xf0] sm:$0xff]  ;;  %v1036_v10 = vld [vmem:[#allocation2 + $0xa8] sm:$0xff] }
   0x9   :  { %574 = vmatpush.bf16.msra.mxu3 %v1046_v5  ;;  %v1044_v11 = vld [vmem:[#allocation2 + $0xe8] sm:$0xff]  ;;  %v1019_v12 = vld [vmem:[#allocation2 + $0x20] sm:$0xff]  ;;  %v1018_v16 = vld [vmem:[#allocation2 + $0x18] sm:$0xff] }
   0xa   :  { %533 = vmatpush.bf16.msra.mxu0 %v1021_v3  ;;  %v1027_v13 = vld [vmem:[#allocation2 + $0x60] sm:$0xff]  ;;  %v1026_v17 = vld [vmem:[#allocation2 + $0x58] sm:$0xff]  ;;  %v1017_v20 = vld [vmem:[#allocation2 + $0x10] sm:$0xff] }
   0xb   :  { %547 = vmatpush.bf16.msra.mxu1 %v1029_v4  ;;  %v1035_v14 = vld [vmem:[#allocation2 + $0xa0] sm:$0xff]  ;;  %v1034_v18 = vld [vmem:[#allocation2 + $0x98] sm:$0xff]  ;;  %v1025_v21 = vld [vmem:[#allocation2 + $0x50] sm:$0xff] }
   0xc   :  { %561 = vmatpush.bf16.msra.mxu2 %v1037_v6  ;;  %v1043_v15 = vld [vmem:[#allocation2 + $0xe0] sm:$0xff]  ;;  %v1042_v19 = vld [vmem:[#allocation2 + $0xd8] sm:$0xff]  ;;  %v1033_v22 = vld [vmem:[#allocation2 + $0x90] sm:$0xff] }
   0xd   :  { %575 = vmatpush.bf16.msra.mxu3 %v1045_v7  ;;  %v1041_v23 = vld [vmem:[#allocation2 + $0xd0] sm:$0xff]  ;;  %v1016_v24 = vld [vmem:[#allocation2 + $0x8] sm:$0xff]  ;;  %v1015_v27 = vld [vmem:[#allocation2] sm:$0xff] }
   0xe   :  { %534 = vmatpush.bf16.msra.mxu0 %v1020_v8  ;;  %v1024_v25 = vld [vmem:[#allocation2 + $0x48] sm:$0xff]  ;;  %v1023_v29 = vld [vmem:[#allocation2 + $0x40] sm:$0xff]  ;;  %v1054_v31 = vld [vmem:[#allocation2 + $0x138] sm:$0xff] }
   0xf   :  { %548 = vmatpush.bf16.msra.mxu1 %v1028_v9  ;;  %v1032_v26 = vld [vmem:[#allocation2 + $0x88] sm:$0xff]  ;;  %v1031_v30 = vld [vmem:[#allocation2 + $0x80] sm:$0xff]  ;;  %v1011_v34 = vld [vmem:[%s1224_s0 + $0x18] sm:$0xf0] }
  0x10   :  { %562 = vmatpush.bf16.msra.mxu2 %v1036_v10  ;;  %v1040_v28 = vld [vmem:[#allocation2 + $0xc8] sm:$0xff]  ;;  %v726_v33 = vld [vmem:[%s1224_s0] sm:$0xf]  ;;  %v1012_v35 = vld [vmem:[%s1224_s0 + $0x20] sm:$0xf0] }
  0x11   :  { %576 = vmatpush.bf16.msra.mxu3 %v1044_v11  ;;  %v734_v32 = vld [vmem:[%s1224_s0 + $0x8] sm:$0xf]  ;;  %v1008_v36 = vld [vmem:[%s1224_s0 + $0x4] sm:$0xf]  ;;  %v728_v37 = vld [vmem:[%s1224_s0 + $0x1c] sm:$0xf0]  ;;  %v727_v41 = vor.u32 %v1011_v34, %v726_v33 }
  0x12   :  { %535 = vmatpush.bf16.msra.mxu0 %v1019_v12  ;;  %v1062_v38 = vld [vmem:[#allocation2 + $0x178] sm:$0xff]  ;;  %v1039_v40 = vld [vmem:[#allocation2 + $0xc0] sm:$0xff]  ;;  %v735_v42 = vor.u32 %v1012_v35, %v734_v32  ;;  %v1009_v43 = vld [vmem:[%s1224_s0 + $0xc] sm:$0xf]  ;;  %v731_v45 = vor.u32 %v1008_v36, %v728_v37 }
  0x13   :  { %549 = vmatpush.bf16.msra.mxu1 %v1027_v13  ;;  %v1070_v39 = vld [vmem:[#allocation2 + $0x1b8] sm:$0xff]  ;;  %v736_v44 = vld [vmem:[%s1224_s0 + $0x24] sm:$0xf0]  ;;  %v1053_v46 = vld [vmem:[#allocation2 + $0x130] sm:$0xff] }
  0x14   :  { %563 = vmatpush.bf16.msra.mxu2 %v1035_v14  ;;  %v1061_v47 = vld [vmem:[#allocation2 + $0x170] sm:$0xff]  ;;  %v739_v49 = vor.u32 %v1009_v43, %v736_v44  ;;  %v1052_v50 = vld [vmem:[#allocation2 + $0x128] sm:$0xff]  ;;  %v1051_v53 = vld [vmem:[#allocation2 + $0x120] sm:$0xff] }
  0x15   :  { %577 = vmatpush.bf16.msra.mxu3 %v1043_v15  ;;  %v1069_v48 = vld [vmem:[#allocation2 + $0x1b0] sm:$0xff]  ;;  %v1060_v51 = vld [vmem:[#allocation2 + $0x168] sm:$0xff]  ;;  %v1059_v54 = vld [vmem:[#allocation2 + $0x160] sm:$0xff] }
  0x16   :  { %536 = vmatpush.bf16.msra.mxu0 %v1018_v16  ;;  %v1068_v52 = vld [vmem:[#allocation2 + $0x1a8] sm:$0xff]  ;;  %v1067_v55 = vld [vmem:[#allocation2 + $0x1a0] sm:$0xff]  ;;  %v1050_v56 = vld [vmem:[#allocation2 + $0x118] sm:$0xff] }
  0x17   :  { %550 = vmatpush.bf16.msra.mxu1 %v1026_v17  ;;  %v1058_v57 = vld [vmem:[#allocation2 + $0x158] sm:$0xff]  ;;  %v1049_v59 = vld [vmem:[#allocation2 + $0x110] sm:$0xff]  ;;  %v1048_v62 = vld [vmem:[#allocation2 + $0x108] sm:$0xff] }
  0x18   :  { %564 = vmatpush.bf16.msra.mxu2 %v1034_v18  ;;  %v1066_v58 = vld [vmem:[#allocation2 + $0x198] sm:$0xff]  ;;  %v1057_v60 = vld [vmem:[#allocation2 + $0x150] sm:$0xff]  ;;  %v1056_v63 = vld [vmem:[#allocation2 + $0x148] sm:$0xff] }
  0x19   :  { %578 = vmatpush.bf16.msra.mxu3 %v1042_v19  ;;  %v1065_v61 = vld [vmem:[#allocation2 + $0x190] sm:$0xff]  ;;  %v1064_v0 = vld [vmem:[#allocation2 + $0x188] sm:$0xff]  ;;  %v1047_v1 = vld [vmem:[#allocation2 + $0x100] sm:$0xff] }
  0x1a   :  { %537 = vmatpush.bf16.msra.mxu0 %v1017_v20  ;;  %v1055_v2 = vld [vmem:[#allocation2 + $0x140] sm:$0xff]  ;;  %v742_v4 = vld [vmem:[%s1224_s0 + $0x10] sm:$0xf]  ;;  %v1013_v5 = vld [vmem:[%s1224_s0 + $0x28] sm:$0xf0] }
  0x1b   :  { %551 = vmatpush.bf16.msra.mxu1 %v1025_v21  ;;  %v1063_v3 = vld [vmem:[#allocation2 + $0x180] sm:$0xff]  ;;  %v1010_v6 = vld [vmem:[%s1224_s0 + $0x14] sm:$0xf]  ;;  %v744_v7 = vld [vmem:[%s1224_s0 + $0x2c] sm:$0xf0]  ;;  %v743_v10 = vor.u32 %v1013_v5, %v742_v4 }
  0x1c   :  { %565 = vmatpush.bf16.msra.mxu2 %v1033_v22  ;;  %v750_v8 = vld [vmem:[%s1224_s0 + $0x18] sm:$0xf]  ;;  %v1014_v9 = vld [vmem:[%s1224_s0 + $0x30] sm:$0xf0]  ;;  %v747_v11 = vor.u32 %v1010_v6, %v744_v7  ;;  %v1076_v15 = vld [vmem:[%s1227_s3 + $0x28] sm:$0xff] }
  0x1d   :  { %579 = vmatpush.bf16.msra.mxu3 %v1041_v23  ;;  %v751_v12 = vor.u32 %v1014_v9, %v750_v8  ;;  %v1078_v13 = vld [vmem:[%s1227_s3 + $0x38] sm:$0xff]  ;;  %v1077_v14 = vld [vmem:[%s1227_s3 + $0x30] sm:$0xff]  ;;  %v1075_v16 = vld [vmem:[%s1227_s3 + $0x20] sm:$0xff] }
  0x1e   :  { %538 = vmatpush.bf16.msra.mxu0 %v1016_v24  ;;  %v1074_v17 = vld [vmem:[%s1227_s3 + $0x18] sm:$0xff]  ;;  %v1073_v18 = vld [vmem:[%s1227_s3 + $0x10] sm:$0xff]  ;;  %v1072_v19 = vld [vmem:[%s1227_s3 + $0x8] sm:$0xff] }
  0x1f   :  { %552 = vmatpush.bf16.msra.mxu1 %v1024_v25  ;;  %v1071_v22 = vld [vmem:[%s1227_s3] sm:$0xff] }
  0x20   :  { %566 = vmatpush.bf16.msra.mxu2 %v1032_v26  ;;  %v1082_v24 = vld [vmem:[%s1226_s2] ss:$0 sm:$0xff] }
  0x21   :  { %580 = vmatpush.bf16.msra.mxu3 %v1040_v28 }
  0x22   :  { %539 = vmatpush.bf16.msra.mxu0 %v1015_v27 }
  0x23   :  { %553 = vmatpush.bf16.msra.mxu1 %v1023_v29 }
  0x24   :  { %567 = vmatpush.bf16.msra.mxu2 %v1031_v30 }
  0x25   :  { %581 = vmatpush.bf16.msra.mxu3 %v1039_v40  ;;  %540 = vmatmul.bf16.vlgmr.msra.gmra.mxu0 %v727_v41 }
  0x26   :  { %588 = vmatpush.bf16.msrb.mxu0 %v1054_v31  ;;  %554 = vmatmul.bf16.vlgmr.msra.gmra.mxu1 %v731_v45 }
  0x27   :  { %602 = vmatpush.bf16.msrb.mxu1 %v1062_v38  ;;  %568 = vmatmul.bf16.vlgmr.msra.gmra.mxu2 %v735_v42 }
  0x28   :  { %616 = vmatpush.bf16.msrb.mxu2 %v1070_v39  ;;  %582 = vmatmul.bf16.vlgmr.msra.gmra.mxu3 %v739_v49 }
  0x29   :  { %701 = vmatpush.bf16.msrb.mxu3 %v1078_v13 }
  0x2a   :  { %589 = vmatpush.bf16.msrb.mxu0 %v1053_v46 }
  0x2b   :  { %603 = vmatpush.bf16.msrb.mxu1 %v1061_v47 }
  0x2c   :  { %617 = vmatpush.bf16.msrb.mxu2 %v1069_v48 }
  0x2d   :  { %702 = vmatpush.bf16.msrb.mxu3 %v1077_v14 }
  0x2e   :  { %590 = vmatpush.bf16.msrb.mxu0 %v1052_v50 }
  0x2f   :  { %604 = vmatpush.bf16.msrb.mxu1 %v1060_v51 }
  0x30   :  { %618 = vmatpush.bf16.msrb.mxu2 %v1068_v52 }
  0x31   :  { %703 = vmatpush.bf16.msrb.mxu3 %v1076_v15 }
  0x32   :  { %591 = vmatpush.bf16.msrb.mxu0 %v1051_v53  ;;  %v1083_v53 = vld [vmem:[%s1228_s4] ss:$0 sm:$0xff] }
  0x33   :  { %605 = vmatpush.bf16.msrb.mxu1 %v1059_v54 }
  0x34   :  { %619 = vmatpush.bf16.msrb.mxu2 %v1067_v55 }
  0x35   :  { %704 = vmatpush.bf16.msrb.mxu3 %v1075_v16 }
  0x36   :  { %592 = vmatpush.bf16.msrb.mxu0 %v1050_v56 }
  0x37   :  { %606 = vmatpush.bf16.msrb.mxu1 %v1058_v57 }
  0x38   :  { %620 = vmatpush.bf16.msrb.mxu2 %v1066_v58 }
  0x39   :  { %705 = vmatpush.bf16.msrb.mxu3 %v1074_v17 }
  0x3a   :  { %593 = vmatpush.bf16.msrb.mxu0 %v1049_v59 }
  0x3b   :  { %607 = vmatpush.bf16.msrb.mxu1 %v1057_v60 }
  0x3c   :  { %621 = vmatpush.bf16.msrb.mxu2 %v1065_v61 }
  0x3d   :  { %706 = vmatpush.bf16.msrb.mxu3 %v1073_v18 }
  0x3e   :  { %594 = vmatpush.bf16.msrb.mxu0 %v1048_v62 }
  0x3f   :  { %608 = vmatpush.bf16.msrb.mxu1 %v1056_v63 }
  0x40   :  { %622 = vmatpush.bf16.msrb.mxu2 %v1064_v0 }
  0x41   :  { %707 = vmatpush.bf16.msrb.mxu3 %v1072_v19 }
  0x42   :  { %595 = vmatpush.bf16.msrb.mxu0 %v1047_v1 }
  0x43   :  { %609 = vmatpush.bf16.msrb.mxu1 %v1055_v2 }
  0x44   :  { %623 = vmatpush.bf16.msrb.mxu2 %v1063_v3 }
  0x45   :  { %596 = vmatmul.bf16.vlgmr.msrb.gmra.mxu0 %v743_v10  ;;  %708 = vmatpush.bf16.msrb.mxu3 %v1071_v22 }
  0x46   :  { %610 = vmatmul.bf16.vlgmr.msrb.gmra.mxu1 %v747_v11 }
  0x47   :  { %624 = vmatmul.bf16.vlgmr.msrb.gmra.mxu2 %v751_v12 }
  0xa2   :  { %v541_v20 = vpop.f32.mrf.mxu0 }
  0xa3   :  { %v555_v21 = vpop.f32.mrf.mxu1  ;;  %v542_v26 = vadd.f32 %v1082_v24, %v541_v20 }
  0xa5   :  { %v556_v30 = vadd.f32 %v555_v21, %v542_v26 }
  0xaa   :  { %v569_v23 = vpop.f32.mrf.mxu2  ;;  %v543_v25 = vpop.f32.mrf.mxu0 }
  0xab   :  { %v583_v27 = vpop.f32.mrf.mxu3  ;;  %v557_v28 = vpop.f32.mrf.mxu1  ;;  %v544_v29 = vadd.f32 %v1082_v24, %v543_v25  ;;  %v570_v34 = vadd.f32 %v569_v23, %v556_v30 }
  0xad   :  { %v558_v32 = vadd.f32 %v557_v28, %v544_v29  ;;  %v584_v38 = vadd.f32 %v583_v27, %v570_v34 }
  0xb2   :  { %v571_v31 = vpop.f32.mrf.mxu2 }
  0xb3   :  { %v572_v36 = vadd.f32 %v571_v31, %v558_v32  ;;  %v585_v37 = vpop.f32.mrf.mxu3 }
  0xb5   :  { %v586_v40 = vadd.f32 %v585_v37, %v572_v36 }
  0xc2   :  { %v597_v33 = vpop.f32.mrf.mxu0 }
  0xc3   :  { %v611_v35 = vpop.f32.mrf.mxu1  ;;  %v598_v41 = vadd.f32 %v597_v33, %v584_v38 }
  0xc5   :  { %v612_v44 = vadd.f32 %v611_v35, %v598_v41 }
  0xca   :  { %v625_v39 = vpop.f32.mrf.mxu2  ;;  %v599_v42 = vpop.f32.mrf.mxu0 }
  0xcb   :  { %v600_v43 = vadd.f32 %v599_v42, %v586_v40  ;;  %v613_v45 = vpop.f32.mrf.mxu1  ;;  %v626_v46 = vadd.f32 %v625_v39, %v612_v44 }
  0xcd   :  { %v614_v47 = vadd.f32 %v613_v45, %v600_v43  ;;  %v630_v50 = vmax.f32 %v626_v46, 0.0 }
  0xd2   :  { %v627_v48 = vpop.f32.mrf.mxu2 }
  0xd3   :  { %v628_v49 = vadd.f32 %v627_v48, %v614_v47 }
  0xd5   :  { %v631_v51 = vmax.f32 %v628_v49, 0.0 }
  0xd7   :  { %v632_v52 = vpack.c.bf16 %v631_v51, %v630_v50 }
  0xd9   :  { %709 = vmatmul.bf16.vlgmr.msrb.gmra.mxu3 %v632_v52 }
 0x15c   :  { %v710_v54 = vpop.f32.mrf.mxu3 }
 0x15d   :  { %v711_v55 = vadd.f32 %v1083_v53, %v710_v54 }
 0x15f   :  { %v715_v56 = vmax.f32 %v711_v55, 0.0 }
 0x161   :  { %717 = vst [vmem:[%s1229_s5] sm:$0xff] %v715_v56 }
 0x164   :  { %v712_v57 = vpop.f32.mrf.mxu3 }
 0x165   :  { %v713_v58 = vadd.f32 %v1083_v53, %v712_v57 }
 0x167   :  { %v716_v59 = vmax.f32 %v713_v58, 0.0 }
 0x169   :  { %718 = vst [vmem:[%s1229_s5 + $0x8] sm:$0xff] %v716_v59 }
 0x16a   :  { %723 = vsyncpa [#allocation3], 1 }

</bundles_post_ra>
